<compile_context>
chip_gen: v7x
topology: tpu7x:2x2x1
jax: 0.10.0
libtpu: 0.0.40
codegen_flags: <defaults>
</compile_context>

<pallas_src>
import jax
import jax.numpy as jnp
from jax.experimental import pallas as pl
from jax.experimental.pallas import tpu as pltpu


def _round_up(x, m):
    return ((x + m - 1) // m) * m


def _tensorcores_per_chip():
    """Best-effort detection of 2-TC parts (v7x); default to 1."""
    try:
        kind = jax.devices()[0].device_kind.lower()
        if "v7" in kind:
            return 2
    except Exception:
        pass
    return 1


def _pick_tk(F, max_tk=2048):
    """Reduction tile: multiple of 128, divides the minimally padded F."""
    F_pad = _round_up(F, 128)
    if F_pad <= max_tk:
        return F_pad, F_pad
    n_lanes = F_pad // 128
    best = max(d for d in range(1, n_lanes + 1)
               if n_lanes % d == 0 and d * 128 <= max_tk)
    tk = best * 128
    if tk < 512:
        # Degenerate divisor structure: prefer modest zero-padding of F over
        # tiny reduction tiles (per-step overhead ~0.35us each).
        tk = 1024
        F_pad = _round_up(F_pad, tk)
    return tk, F_pad


def _pick_tm(B, *, max_tm=512):
    """Batch tile: as large as possible (fewer weight re-reads), but keep at
    least one tile per TensorCore on multi-core chips when B is big enough."""
    n_cores = _tensorcores_per_chip()
    if n_cores > 1 and B >= 16:
        tm = _round_up(-(-B // n_cores), 8)
    else:
        tm = _round_up(B, 8)
    return max(8, min(tm, max_tm))


def _vmem_limit_bytes(tm, tk, n_cols, nc_pad, d_pad, folded):
    """Budget VMEM from the actual (double-buffered) working set + headroom."""
    bf16, f32 = 2, 4
    need = 2 * tm * tk * bf16          # x tile, double-buffered
    need += 2 * tk * n_cols * bf16     # streamed weight tile, double-buffered
    need += 2 * 1 * n_cols * f32       # bias (tiny)
    need += 2 * tm * nc_pad * f32      # output tile
    if not folded:
        need += 2 * d_pad * nc_pad * bf16  # resident text embeddings
        need += tm * d_pad * f32           # f32 accumulator scratch
    limit = int(need * 1.5) + (4 << 20)
    # Never push near v7x's 64 MiB physical VMEM; floor keeps compiler headroom.
    return max(24 << 20, min(limit, 48 << 20))


# ---------------------------------------------------------------------------
# Pallas kernels
# ---------------------------------------------------------------------------
def _zsc_folded_kernel(x_ref, w_ref, b_ref, o_ref):
    # x_ref: (tm, tk)      bf16   flattened image tile
    # w_ref: (tk, NC_pad)  bf16   folded frozen weights (W_img @ text_emb)
    # b_ref: (1, NC_pad)   f32    folded bias (b_img @ text_emb)
    # o_ref: (tm, NC_pad)  f32    logits tile, resident across the k axis
    k = pl.program_id(1)
    partial = jnp.dot(x_ref[...], w_ref[...], preferred_element_type=jnp.float32)

    @pl.when(k == 0)
    def _():
        o_ref[...] = partial + b_ref[...]

    @pl.when(k > 0)
    def _():
        o_ref[...] += partial


def _zsc_two_stage_kernel(x_ref, w_img_ref, b_img_ref, t_emb_ref, o_ref, acc_ref):
    # x_ref:     (tm, tk)       bf16   flattened image tile
    # w_img_ref: (tk, D_pad)    bf16   image-encoder projection tile (streamed)
    # b_img_ref: (1, D_pad)     f32    image-encoder bias
    # t_emb_ref: (D_pad, NC_pad) bf16  frozen text embeddings (lane-dense)
    # o_ref:     (tm, NC_pad)   f32    logits tile
    # acc_ref:   (tm, D_pad)    f32    VMEM accumulator (image embedding)
    k = pl.program_id(1)
    partial = jnp.dot(x_ref[...], w_img_ref[...], preferred_element_type=jnp.float32)

    @pl.when(k == 0)
    def _():
        # Bias folded into the first write: no separate zero-store + VPU add.
        acc_ref[...] = partial + b_img_ref[...]

    @pl.when(k > 0)
    def _():
        acc_ref[...] += partial

    @pl.when(k == pl.num_programs(1) - 1)
    def _():
        o_ref[...] = jnp.dot(acc_ref[...].astype(t_emb_ref.dtype), t_emb_ref[...],
                             preferred_element_type=jnp.float32)


# ---------------------------------------------------------------------------
# Init-time preparation of the frozen parameters (cast / fold / pad ONCE)
# ---------------------------------------------------------------------------
def prepare_frozen_params(w_img, b_img, text_embeddings, *, max_tk=2048):
    F, D = w_img.shape
    D2, NC = text_embeddings.shape
    assert D == D2, "embed dims must match"

    D_pad = _round_up(D, 128)      # do NOT over-pad D (HBM-bound, not MXU-bound)
    NC_pad = _round_up(NC, 128)
    tk, F_pad = _pick_tk(F, max_tk)

    fold = NC_pad <= D_pad
    if fold:
        # Frozen weights: fold the classifier into the projection at init.
        w_comb = w_img.astype(jnp.float32) @ text_embeddings.astype(jnp.float32)  # (F, NC)
        b_comb = b_img.astype(jnp.float32) @ text_embeddings.astype(jnp.float32)  # (NC,)
        w_p = jnp.zeros((F_pad, NC_pad), jnp.bfloat16)
        w_p = w_p.at[:F, :NC].set(w_comb.astype(jnp.bfloat16))
        b_p = jnp.zeros((1, NC_pad), jnp.float32).at[0, :NC].set(b_comb)
        return {"mode": "folded", "w": w_p, "b": b_p,
                "F": F, "F_pad": F_pad, "tk": tk,
                "D_pad": D_pad, "NC": NC, "NC_pad": NC_pad}

    w_p = jnp.zeros((F_pad, D_pad), jnp.bfloat16)
    w_p = w_p.at[:F, :D].set(w_img.astype(jnp.bfloat16))
    b_p = jnp.zeros((1, D_pad), jnp.float32).at[0, :D].set(b_img.astype(jnp.float32))
    t_p = jnp.zeros((D_pad, NC_pad), jnp.bfloat16)
    t_p = t_p.at[:D, :NC].set(text_embeddings.astype(jnp.bfloat16))
    return {"mode": "two_stage", "w": w_p, "b": b_p, "t": t_p,
            "F": F, "F_pad": F_pad, "tk": tk,
            "D_pad": D_pad, "NC": NC, "NC_pad": NC_pad}


# ---------------------------------------------------------------------------
# Forward wrapper
# ---------------------------------------------------------------------------
def zeroshot_forward(image_nchw, params, *, max_tm=512):
    """FrozenZeroshotClassifier.forward via a fused, K-tiled Pallas kernel."""
    B = image_nchw.shape[0]
    F, F_pad, tk = params["F"], params["F_pad"], params["tk"]
    NC, NC_pad, D_pad = params["NC"], params["NC_pad"], params["D_pad"]
    folded = params["mode"] == "folded"

    tm = _pick_tm(B, max_tm=max_tm)
    B_pad = _round_up(B, tm)

    # bf16 cast first, then pad only B rows and at most 127 feature columns
    # (no full padded-copy materialization).
    x = image_nchw.reshape(B, -1).astype(jnp.bfloat16)
    if B_pad != B or F_pad != F:
        x = jnp.pad(x, ((0, B_pad - B), (0, F_pad - F)))

    grid = (B_pad // tm, F_pad // tk)   # reduction axis (F) last

    n_cols = NC_pad if folded else D_pad
    cparams = pltpu.CompilerParams(
        dimension_semantics=("parallel", "arbitrary"),
        vmem_limit_bytes=_vmem_limit_bytes(tm, tk, n_cols, NC_pad, D_pad, folded),
    )

    if folded:
        out = pl.pallas_call(
            _zsc_folded_kernel,
            out_shape=jax.ShapeDtypeStruct((B_pad, NC_pad), jnp.float32),
            grid_spec=pltpu.PrefetchScalarGridSpec(
                num_scalar_prefetch=0,
                grid=grid,
                in_specs=[
                    pl.BlockSpec((tm, tk), lambda i, k: (i, k)),        # x tile
                    pl.BlockSpec((tk, NC_pad), lambda i, k: (k, 0)),    # W_comb tile
                    pl.BlockSpec((1, NC_pad), lambda i, k: (0, 0)),     # folded bias
                ],
                out_specs=pl.BlockSpec((tm, NC_pad), lambda i, k: (i, 0)),
            ),
            compiler_params=cparams,
        )(x, params["w"], params["b"])
    else:
        # TODO(synk): for very large class counts (NC_pad*D_pad bf16 ~tens of MiB)
        # add an NC grid axis tiling t_emb / the output over classes.
        out = pl.pallas_call(
            _zsc_two_stage_kernel,
            out_shape=jax.ShapeDtypeStruct((B_pad, NC_pad), jnp.float32),
            grid_spec=pltpu.PrefetchScalarGridSpec(
                num_scalar_prefetch=0,
                grid=grid,
                in_specs=[
                    pl.BlockSpec((tm, tk), lambda i, k: (i, k)),          # x tile
                    pl.BlockSpec((tk, D_pad), lambda i, k: (k, 0)),       # W_img tile
                    pl.BlockSpec((1, D_pad), lambda i, k: (0, 0)),        # bias
                    pl.BlockSpec((D_pad, NC_pad), lambda i, k: (0, 0)),   # text emb
                ],
                out_specs=pl.BlockSpec((tm, NC_pad), lambda i, k: (i, 0)),
                scratch_shapes=[pltpu.VMEM((tm, D_pad), jnp.float32)],
            ),
            compiler_params=cparams,
        )(x, params["w"], params["b"], params["t"])

    # Padded batch rows / class columns hold garbage logits; slice them off.
    return out[:B, :NC]


# ---------------------------------------------------------------------------
# Synthetic "CLIP" pieces (deterministic init) — plain JAX glue (init-time)
# ---------------------------------------------------------------------------
def encode_text(toks, token_table, w_txt):
    """toks: (num_templates, seq_len) int32 -> (num_templates, D)."""
    emb = token_table[toks]                    # (T, S, D_tok)
    emb = emb.mean(axis=1)                     # (T, D_tok)
    return emb @ w_txt                         # (T, D)


def give_zs_weights(toks_per_class, token_table, w_txt):
    """Mirror of the PyTorch give_zs_weights: returns (D, num_classes)."""
    weights = []
    for cls_toks in toks_per_class:
        class_embeddings = encode_text(cls_toks, token_table, w_txt)       # (T, D)
        class_embeddings = class_embeddings / jnp.linalg.norm(
            class_embeddings, axis=-1, keepdims=True)                      # normalize dim=-1
        class_embedding = class_embeddings.mean(axis=0)                    # (D,)
        class_embedding = class_embedding / jnp.linalg.norm(class_embedding)
        weights.append(class_embedding)
    return jnp.stack(weights, axis=1)           # (D, num_classes)


# ---------------------------------------------------------------------------
# Pure-JAX f32 reference for the forward (correctness check)
# ---------------------------------------------------------------------------
def forward_ref(image_nchw, w_img, b_img, text_embeddings):
    B = image_nchw.shape[0]
    x = image_nchw.reshape(B, -1).astype(jnp.float32)
    img_emb = x @ w_img + b_img
    return img_emb @ text_embeddings


if __name__ == "__main__":
    key = jax.random.PRNGKey(0)

    # Small shapes consistent with the module's forward.
    B, C, H, W = 2, 4, 16, 16          # image: NCHW
    F = C * H * W                       # 1024 flattened image features
    D = 32                              # shared embedding dim
    D_TOK = 16                          # token-embedding dim
    VOCAB = 64
    NUM_CLASSES = 8
    NUM_TEMPLATES = 3
    SEQ = 8

    k1, k2, k3, k4, k5, k6, k7 = jax.random.split(key, 7)

    # Synthetic frozen model parameters.
    w_img = jax.random.normal(k1, (F, D), dtype=jnp.float32) * 0.02
    b_img = jax.random.normal(k2, (D,), dtype=jnp.float32) * 0.01
    token_table = jax.random.normal(k3, (VOCAB, D_TOK), dtype=jnp.float32) * 0.1
    w_txt = jax.random.normal(k4, (D_TOK, D), dtype=jnp.float32) * 0.1

    # zeroshot_templates: per-class token ids, shape (num_templates, seq_len).
    toks_per_class = [
        jax.random.randint(jax.random.fold_in(k5, c), (NUM_TEMPLATES, SEQ),
                           0, VOCAB, dtype=jnp.int32)
        for c in range(NUM_CLASSES)
    ]

    # __init__: frozen text embeddings (D, NUM_CLASSES), then one-time fold /
    # bf16 cast / lane-dense padding of all frozen forward-pass params.
    text_embeddings = give_zs_weights(toks_per_class, token_table, w_txt)
    frozen = prepare_frozen_params(w_img, b_img, text_embeddings)
    assert frozen["mode"] == "folded"   # NC_pad <= D_pad -> single-matmul path

    # forward(image)
    image = jax.random.normal(k6, (B, C, H, W), dtype=jnp.float32)

    logits = zeroshot_forward(image, frozen)
    logits = jax.block_until_ready(logits)

    ref = forward_ref(image, w_img, b_img, text_embeddings)
    assert logits.shape == (B, NUM_CLASSES)
    # bf16 operands with f32 accumulation -> loosened tolerance vs f32 ref.
    assert jnp.allclose(logits, ref, atol=5e-2, rtol=5e-2), (
        f"mismatch (folded): max abs err {jnp.max(jnp.abs(logits - ref))}")

    # Also exercise the two-stage path (NC > D -> no classifier fold).
    NC_BIG = 200
    t_big = jax.random.normal(k7, (D, NC_BIG), dtype=jnp.float32)
    t_big = t_big / jnp.linalg.norm(t_big, axis=0, keepdims=True)
    frozen_big = prepare_frozen_params(w_img, b_img, t_big)
    assert frozen_big["mode"] == "two_stage"
    logits_big = jax.block_until_ready(zeroshot_forward(image, frozen_big))
    ref_big = forward_ref(image, w_img, b_img, t_big)
    assert logits_big.shape == (B, NC_BIG)
    assert jnp.allclose(logits_big, ref_big, atol=5e-2, rtol=5e-2), (
        f"mismatch (two-stage): max abs err {jnp.max(jnp.abs(logits_big - ref_big))}")

    print("KERNEL_OK")
</pallas_src>

<mosaic_0001>
module attributes {stable_mosaic.version = 11 : i64} {
  func.func @_zsc_folded_kernel(%arg0: i32, %arg1: i32, %arg2: memref<8x1024xbf16, #tpu.memory_space<vmem>>, %arg3: memref<1024x128xbf16, #tpu.memory_space<vmem>>, %arg4: memref<1x128xf32, #tpu.memory_space<vmem>>, %arg5: memref<8x128xf32, #tpu.memory_space<vmem>>) attributes {dimension_semantics = [#tpu.dimension_semantics<parallel>, #tpu.dimension_semantics<arbitrary>], iteration_bounds = array<i64: 1, 1>, scalar_prefetch = 0 : i64, scratch_operands = 0 : i64, tpu.core_type = #tpu.core_type<tc>, window_params = [{transform_indices = @transform_0, window_bounds = array<i64: 8, 1024>}, {transform_indices = @transform_1, window_bounds = array<i64: 1024, 128>}, {pipeline_mode = #tpu.pipeline_mode<synchronous>, transform_indices = @transform_2, window_bounds = array<i64: 1, 128>}, {transform_indices = @transform_3, window_bounds = array<i64: 8, 128>}]} {
    %c0 = arith.constant 0 : index
    %c0_0 = arith.constant 0 : index
    %0 = vector.load %arg2[%c0, %c0_0] : memref<8x1024xbf16, #tpu.memory_space<vmem>>, vector<8x1024xbf16>
    %c0_1 = arith.constant 0 : index
    %c0_2 = arith.constant 0 : index
    %1 = vector.load %arg3[%c0_1, %c0_2] : memref<1024x128xbf16, #tpu.memory_space<vmem>>, vector<1024x128xbf16>
    %cst = arith.constant dense<0.000000e+00> : vector<8x128xf32>
    %2 = tpu.matmul %0, %1, %cst {dimension_numbers = #tpu.dot_dimension_numbers<[1], [0], [0], [1], [0, 0, 1, 1], [], []>} : vector<8x1024xbf16>, vector<1024x128xbf16>, vector<8x128xf32> -> vector<8x128xf32>
    %c0_i32 = arith.constant 0 : i32
    %3 = arith.cmpi eq, %arg1, %c0_i32 : i32
    %4 = arith.extui %3 : i1 to i32
    %c0_i32_3 = arith.constant 0 : i32
    %5 = arith.cmpi ne, %4, %c0_i32_3 : i32
    scf.if %5 {
      %c0_6 = arith.constant 0 : index
      %c0_7 = arith.constant 0 : index
      %9 = vector.load %arg4[%c0_6, %c0_7] : memref<1x128xf32, #tpu.memory_space<vmem>>, vector<1x128xf32>
      %10 = vector.broadcast %9 : vector<1x128xf32> to vector<8x128xf32>
      %11 = arith.addf %2, %10 : vector<8x128xf32>
      %c0_8 = arith.constant 0 : index
      %c0_9 = arith.constant 0 : index
      %12 = vector.load %arg5[%c0_8, %c0_9] : memref<8x128xf32, #tpu.memory_space<vmem>>, vector<8x128xf32>
      tpu.vector_store %arg5[%c0_8, %c0_9], %11 {strides = array<i32>} : memref<8x128xf32, #tpu.memory_space<vmem>>, vector<8x128xf32>,
    } else {
    }
    %c0_i32_4 = arith.constant 0 : i32
    %6 = arith.cmpi sgt, %arg1, %c0_i32_4 : i32
    %7 = arith.extui %6 : i1 to i32
    %c0_i32_5 = arith.constant 0 : i32
    %8 = arith.cmpi ne, %7, %c0_i32_5 : i32
    scf.if %8 {
      %c0_6 = arith.constant 0 : index
      %c0_7 = arith.constant 0 : index
      %9 = vector.load %arg5[%c0_6, %c0_7] : memref<8x128xf32, #tpu.memory_space<vmem>>, vector<8x128xf32>
      %10 = arith.addf %9, %2 : vector<8x128xf32>
      %c0_8 = arith.constant 0 : index
      %c0_9 = arith.constant 0 : index
      %11 = vector.load %arg5[%c0_8, %c0_9] : memref<8x128xf32, #tpu.memory_space<vmem>>, vector<8x128xf32>
      tpu.vector_store %arg5[%c0_8, %c0_9], %10 {strides = array<i32>} : memref<8x128xf32, #tpu.memory_space<vmem>>, vector<8x128xf32>,
    } else {
    }
    return
  }
  func.func @transform_0(%arg0: i32, %arg1: i32) -> (i32, i32) {
    %c0_i32 = arith.constant 0 : i32
    return %arg0, %arg1 : i32, i32
  }
  func.func @transform_1(%arg0: i32, %arg1: i32) -> (i32, i32) {
    %c0_i32 = arith.constant 0 : i32
    %c0_i32_0 = arith.constant 0 : i32
    return %arg1, %c0_i32 : i32, i32
  }
  func.func @transform_2(%arg0: i32, %arg1: i32) -> (i32, i32) {
    %c0_i32 = arith.constant 0 : i32
    %c0_i32_0 = arith.constant 0 : i32
    %c0_i32_1 = arith.constant 0 : i32
    return %c0_i32, %c0_i32_0 : i32, i32
  }
  func.func @transform_3(%arg0: i32, %arg1: i32) -> (i32, i32) {
    %c0_i32 = arith.constant 0 : i32
    %c0_i32_0 = arith.constant 0 : i32
    return %arg0, %c0_i32 : i32, i32
  }
}

</mosaic_0001>

<bundles_post_ra>
// kernel: tpu_custom_call.1
= control target key start
LH: loop header
LB: loop body
LE: loop exit
PB: predicated region body
PF: predicated region fallthrough
CT: control target
= control target key end

     0   :  { %8 = vsyncpa [#allocation3], 0  ;;  %s1163_s0 = inlined_call_operand.hbm [shape: bf16[8,1024], index: 0, kind: input, shape index: {}]   ;;  %s1164_s1 = inlined_call_operand.hbm [shape: bf16[1024,128], index: 1, kind: input, shape index: {}]   ;;  %s1165_s2 = inlined_call_operand.vmem [shape: f32[1,128], index: 2, kind: input, shape index: {}]   ;;  %s1166_s3 = inlined_call_operand.hbm [shape: f32[8,128], index: 3, kind: output, shape index: {}]  }
   0x1   :  { %9 = vsyncpa [#allocation6], 0 }
   0x2   :  { %10 = vsyncpa [#allocation4], 0  ;;  %s1092_s12 = smov [#allocation2]   ;;  %s1093_s14 = smov [#allocation5]  }
   0x3   :  { %s17_s13 = sshll.u32 %s1092_s12, 4  ;;  %s26_s15 = sshll.u32 %s1093_s14, 4  ;;  %s18_s13 = int_to_ptr.vmem [resolvable:$true] %s17_s13  ;;  %s1117_s15 = int_to_ptr.vmem [resolvable:$true] %s26_s15 }
   0x4   :  { %s1020_s18 = scalar_lea.hbm %s1163_s0, 512 }
   0x5   :  { %p1021_p0 = scmp.ne.s32.totalorder %s1163_s0, %s1020_s18  ;;  %p1024_p1 = scmp.lt.u32.totalorder %s1020_s18, %s1163_s0 }
   0x7   :  { %p1026_p2 = pnand %p1024_p1, %p1021_p0 }
   0x9   :  { %1029 = shalt.err (!%p1026_p2)
}
   0xa   :  { %s1030_s23 = scalar_lea.vmem %s18_s13, 512  ;;  %p1035_p4 = scmp.lt.s32.totalorder %s18_s13, %s18_s13 }
   0xb   :  { %p1031_p3 = scmp.ne.s32.totalorder %s18_s13, %s1030_s23  ;;  %p1036_p5 = scmp.lt.s32.totalorder %s1030_s23, %s1030_s23 }
   0xd   :  { %p1037_p6 = por %p1036_p5, %p1035_p4 }
   0xf   :  { %p1038_p7 = pnand %p1037_p6, %p1031_p3 }
  0x11   :  { %1041 = shalt.err (!%p1038_p7)
}
  0x12   :  { %20 = dma.hbm_to_vmem [thread:$0]  %s1163_s0, 512, %s18_s13, [#allocation3]  }
  0x13   :  { %s1042_s28 = scalar_lea.hbm %s1164_s1, 8192 }
  0x14   :  { %p1043_p8 = scmp.ne.s32.totalorder %s1164_s1, %s1042_s28  ;;  %p1046_p9 = scmp.lt.u32.totalorder %s1042_s28, %s1164_s1 }
  0x16   :  { %p1048_p10 = pnand %p1046_p9, %p1043_p8 }
  0x18   :  { %1051 = shalt.err (!%p1048_p10)
}
  0x19   :  { %s1052_s6 = scalar_lea.vmem %s1117_s15, 8192  ;;  %p1057_p12 = scmp.lt.s32.totalorder %s1117_s15, %s1117_s15 }
  0x1a   :  { %p1053_p11 = scmp.ne.s32.totalorder %s1117_s15, %s1052_s6  ;;  %p1058_p13 = scmp.lt.s32.totalorder %s1052_s6, %s1052_s6 }
  0x1c   :  { %p1059_p0 = por %p1058_p13, %p1057_p12 }
  0x1e   :  { %p1060_p1 = pnand %p1059_p0, %p1053_p11 }
  0x20   :  { %1063 = shalt.err (!%p1060_p1)
}
  0x21   :  { %s1094_s0 = smov 64   ;;  %s1095_s7 = smov 4  }
  0x22   :  { %32 = dma.hbm_to_vmem [thread:$0]  %s1164_s1, 8192, %s1117_s15, [#allocation6], %s1094_s0, %s1094_s0, %s1095_s7  }
  0x23   :  { %1086 = dma.done.wait [#allocation3], 512  }
  0x24   :  { %1087 = vsyncadd [#allocation3], 4294966784 }
  0x25   :  { %1088 = dma.done.wait [#allocation6], 8192  }
  0x26   :  { %1089 = vsyncadd [#allocation6], 4294959104  ;;  %v948_v0 = vld [vmem:[#allocation5 + $0x40] sm:$0xff]   ;;  %v952_v4 = vld [vmem:[#allocation5 + $0x48] sm:$0xff]   ;;  %s1096_s11 = smov [#allocation7]  }
  0x27   :  { %v949_v1 = vld [vmem:[#allocation5 + $0xc0] sm:$0xff]   ;;  %855 = vmatprep.subr.bf16.mxu0 %v948_v0  ;;  %v953_v5 = vld [vmem:[#allocation5 + $0xc8] sm:$0xff]   ;;  %v956_v8 = vld [vmem:[#allocation5 + $0x50] sm:$0xff]   ;;  %s772_s12 = sshll.u32 %s1096_s11, 4  ;;  %s773_s12 = int_to_ptr.vmem [resolvable:$true] %s772_s12 }
  0x28   :  { %v950_v2 = vld [vmem:[#allocation5] sm:$0xff]   ;;  %877 = vmatprep.subr.bf16.mxu1 %v949_v1  ;;  %v954_v6 = vld [vmem:[#allocation5 + $0x8] sm:$0xff]   ;;  %v957_v9 = vld [vmem:[#allocation5 + $0xd0] sm:$0xff]   ;;  %s1064_s13 = scalar_lea.vmem %s773_s12, 128  ;;  %p1069_p3 = scmp.lt.s32.totalorder %s773_s12, %s773_s12 }
  0x29   :  { %v951_v3 = vld [vmem:[#allocation5 + $0x80] sm:$0xff]   ;;  %856 = vmatpush3.bf16.msra.mxu0 %v950_v2  ;;  %v955_v7 = vld [vmem:[#allocation5 + $0x88] sm:$0xff]   ;;  %v958_v10 = vld [vmem:[#allocation5 + $0x10] sm:$0xff]   ;;  %p1065_p2 = scmp.ne.s32.totalorder %s773_s12, %s1064_s13  ;;  %p1070_p4 = scmp.lt.s32.totalorder %s1064_s13, %s1064_s13 }
  0x2a   :  { %878 = vmatpush3.bf16.msra.mxu1 %v951_v3  ;;  %857 = vmatprep.subr.bf16.mxu0 %v952_v4  ;;  %v959_v11 = vld [vmem:[#allocation5 + $0x90] sm:$0xff]   ;;  %v960_v12 = vld [vmem:[#allocation5 + $0x58] sm:$0xff]   ;;  %v964_v16 = vld [vmem:[#allocation5 + $0x60] sm:$0xff]  }
  0x2b   :  { %879 = vmatprep.subr.bf16.mxu1 %v953_v5  ;;  %v961_v13 = vld [vmem:[#allocation5 + $0xd8] sm:$0xff]   ;;  %v965_v17 = vld [vmem:[#allocation5 + $0xe0] sm:$0xff]   ;;  %v968_v20 = vld [vmem:[#allocation5 + $0x68] sm:$0xff]   ;;  %p1071_p5 = por %p1070_p4, %p1069_p3 }
  0x2c   :  { %v962_v14 = vld [vmem:[#allocation5 + $0x18] sm:$0xff]   ;;  %v966_v18 = vld [vmem:[#allocation5 + $0x20] sm:$0xff]   ;;  %v969_v21 = vld [vmem:[#allocation5 + $0xe8] sm:$0xff]  }
  0x2d   :  { %858 = vmatpush3.bf16.msra.mxu0 %v954_v6  ;;  %v963_v15 = vld [vmem:[#allocation5 + $0x98] sm:$0xff]   ;;  %v967_v19 = vld [vmem:[#allocation5 + $0xa0] sm:$0xff]   ;;  %v970_v22 = vld [vmem:[#allocation5 + $0x28] sm:$0xff]   ;;  %p1072_p6 = pnand %p1071_p5, %p1065_p2 }
  0x2e   :  { %880 = vmatpush3.bf16.msra.mxu1 %v955_v7  ;;  %859 = vmatprep.subr.bf16.mxu0 %v956_v8  ;;  %v971_v23 = vld [vmem:[#allocation5 + $0xa8] sm:$0xff]   ;;  %v972_v24 = vld [vmem:[#allocation5 + $0x70] sm:$0xff]   ;;  %v976_v28 = vld [vmem:[#allocation5 + $0x78] sm:$0xff]  }
  0x2f   :  { %881 = vmatprep.subr.bf16.mxu1 %v957_v9  ;;  %v973_v25 = vld [vmem:[#allocation5 + $0xf0] sm:$0xff]   ;;  %v977_v29 = vld [vmem:[#allocation5 + $0xf8] sm:$0xff]   ;;  %v42_v32 = vld [vmem:[#allocation2] sm:$0xff] }
  0x30   :  { %v974_v26 = vld [vmem:[#allocation5 + $0x30] sm:$0xff]   ;;  %v978_v30 = vld [vmem:[#allocation5 + $0x38] sm:$0xff]   ;;  %v43_v33 = vld [vmem:[#allocation2 + $0x8] sm:$0xff]  ;;  %v782_v34 = vcombine.low %v42_v32, %v42_v32  ;;  %v783_v35 = vcombine.high %v42_v32, %v42_v32 }
  0x31   :  { %860 = vmatpush3.bf16.msra.mxu0 %v958_v10  ;;  %v975_v27 = vld [vmem:[#allocation5 + $0xb0] sm:$0xff]   ;;  %v979_v31 = vld [vmem:[#allocation5 + $0xb8] sm:$0xff]   ;;  %v784_v36 = vcombine.low %v43_v33, %v43_v33  ;;  %v785_v37 = vcombine.high %v43_v33, %v43_v33  ;;  %v984_v38 = vld [vmem:[#allocation5 + $0x140] sm:$0xff]  }
  0x32   :  { %882 = vmatpush3.bf16.msra.mxu1 %v959_v11  ;;  %861 = vmatprep.subr.bf16.mxu0 %v960_v12  ;;  %v985_v39 = vld [vmem:[#allocation5 + $0x1c0] sm:$0xff]   ;;  %v988_v42 = vld [vmem:[#allocation5 + $0x148] sm:$0xff]   ;;  %v992_v46 = vld [vmem:[#allocation5 + $0x150] sm:$0xff]  }
  0x33   :  { %883 = vmatprep.subr.bf16.mxu1 %v961_v13  ;;  %618 = vmatprep.mubr.bf16.mxu0 %v783_v35  ;;  %v986_v40 = vld [vmem:[#allocation5 + $0x100] sm:$0xff]   ;;  %v989_v43 = vld [vmem:[#allocation5 + $0x1c8] sm:$0xff]   ;;  %v993_v47 = vld [vmem:[#allocation5 + $0x1d0] sm:$0xff]  }
  0x34   :  { %658 = vmatprep.mubr.bf16.mxu1 %v785_v37  ;;  %v987_v41 = vld [vmem:[#allocation5 + $0x180] sm:$0xff]   ;;  %v990_v44 = vld [vmem:[#allocation5 + $0x108] sm:$0xff]   ;;  %v994_v48 = vld [vmem:[#allocation5 + $0x110] sm:$0xff]  }
  0x35   :  { %862 = vmatpush3.bf16.msra.mxu0 %v962_v14  ;;  %v991_v45 = vld [vmem:[#allocation5 + $0x188] sm:$0xff]   ;;  %v995_v49 = vld [vmem:[#allocation5 + $0x190] sm:$0xff]   ;;  %v996_v50 = vld [vmem:[#allocation5 + $0x158] sm:$0xff]  }
  0x36   :  { %884 = vmatpush3.bf16.msra.mxu1 %v963_v15  ;;  %863 = vmatprep.subr.bf16.mxu0 %v964_v16  ;;  %v997_v51 = vld [vmem:[#allocation5 + $0x1d8] sm:$0xff]   ;;  %v1000_v54 = vld [vmem:[#allocation5 + $0x160] sm:$0xff]   ;;  %v1004_v58 = vld [vmem:[#allocation5 + $0x168] sm:$0xff]  }
  0x37   :  { %885 = vmatprep.subr.bf16.mxu1 %v965_v17  ;;  %v998_v52 = vld [vmem:[#allocation5 + $0x118] sm:$0xff]   ;;  %v1001_v55 = vld [vmem:[#allocation5 + $0x1e0] sm:$0xff]   ;;  %v1005_v59 = vld [vmem:[#allocation5 + $0x1e8] sm:$0xff]  }
  0x38   :  { %v999_v53 = vld [vmem:[#allocation5 + $0x198] sm:$0xff]   ;;  %v1002_v56 = vld [vmem:[#allocation5 + $0x120] sm:$0xff]   ;;  %v1006_v60 = vld [vmem:[#allocation5 + $0x128] sm:$0xff]  }
  0x39   :  { %864 = vmatpush3.bf16.msra.mxu0 %v966_v18  ;;  %v1003_v57 = vld [vmem:[#allocation5 + $0x1a0] sm:$0xff]   ;;  %v1007_v61 = vld [vmem:[#allocation5 + $0x1a8] sm:$0xff]   ;;  %v1008_v62 = vld [vmem:[#allocation5 + $0x170] sm:$0xff]  }
  0x3a   :  { %886 = vmatpush3.bf16.msra.mxu1 %v967_v19  ;;  %865 = vmatprep.subr.bf16.mxu0 %v968_v20  ;;  %v1009_v63 = vld [vmem:[#allocation5 + $0x1f0] sm:$0xff]   ;;  %v1012_v2 = vld [vmem:[#allocation5 + $0x178] sm:$0xff]  }
  0x3b   :  { %887 = vmatprep.subr.bf16.mxu1 %v969_v21  ;;  %v1010_v0 = vld [vmem:[#allocation5 + $0x130] sm:$0xff]   ;;  %v1013_v3 = vld [vmem:[#allocation5 + $0x1f8] sm:$0xff]  }
  0x3c   :  { %v1011_v1 = vld [vmem:[#allocation5 + $0x1b0] sm:$0xff]   ;;  %v1014_v4 = vld [vmem:[#allocation5 + $0x138] sm:$0xff]  }
  0x3d   :  { %866 = vmatpush3.bf16.msra.mxu0 %v970_v22  ;;  %v1015_v5 = vld [vmem:[#allocation5 + $0x1b8] sm:$0xff]   ;;  %v44_v6 = vld [vmem:[#allocation2 + $0x10] sm:$0xff] }
  0x3e   :  { %888 = vmatpush3.bf16.msra.mxu1 %v971_v23  ;;  %867 = vmatprep.subr.bf16.mxu0 %v972_v24  ;;  %v786_v7 = vcombine.low %v44_v6, %v44_v6  ;;  %v787_v8 = vcombine.high %v44_v6, %v44_v6  ;;  %v45_v9 = vld [vmem:[#allocation2 + $0x18] sm:$0xff] }
  0x3f   :  { %889 = vmatprep.subr.bf16.mxu1 %v973_v25  ;;  %v788_v10 = vcombine.low %v45_v9, %v45_v9  ;;  %v789_v11 = vcombine.high %v45_v9, %v45_v9 }
  0x41   :  { %868 = vmatpush3.bf16.msra.mxu0 %v974_v26 }
  0x42   :  { %890 = vmatpush3.bf16.msra.mxu1 %v975_v27  ;;  %869 = vmatprep.subr.bf16.mxu0 %v976_v28 }
  0x43   :  { %891 = vmatprep.subr.bf16.mxu1 %v977_v29 }
  0x45   :  { %870 = vmatpush3.bf16.msra.mxu0 %v978_v30 }
  0x46   :  { %892 = vmatpush3.bf16.msra.mxu1 %v979_v31  ;;  %899 = vmatprep.subr.bf16.mxu0 %v984_v38 }
  0x47   :  { %921 = vmatprep.subr.bf16.mxu1 %v985_v39 }
  0x48   :  { %619 = vmatmul.mubr.bf16.vlgmr.msra.gmra.mrb[0].mxu0 %v782_v34  ;;  %v854_v34 = vld [vmem:[%s1165_s2] ss:$0 sm:$0xff] }
  0x49   :  { %659 = vmatmul.mubr.bf16.vlgmr.msra.gmra.mrb[0].mxu1 %v784_v36  ;;  %900 = vmatpush3.bf16.msra.mxu0 %v986_v40 }
  0x4a   :  { %922 = vmatpush3.bf16.msra.mxu1 %v987_v41  ;;  %901 = vmatprep.subr.bf16.mxu0 %v988_v42 }
  0x4b   :  { %923 = vmatprep.subr.bf16.mxu1 %v989_v43  ;;  %698 = vmatprep.mubr.bf16.mxu0 %v787_v8 }
  0x4c   :  { %738 = vmatprep.mubr.bf16.mxu1 %v789_v11 }
  0x4d   :  { %902 = vmatpush3.bf16.msra.mxu0 %v990_v44 }
  0x4e   :  { %924 = vmatpush3.bf16.msra.mxu1 %v991_v45  ;;  %903 = vmatprep.subr.bf16.mxu0 %v992_v46 }
  0x4f   :  { %925 = vmatprep.subr.bf16.mxu1 %v993_v47 }
  0x51   :  { %904 = vmatpush3.bf16.msra.mxu0 %v994_v48 }
  0x52   :  { %926 = vmatpush3.bf16.msra.mxu1 %v995_v49  ;;  %905 = vmatprep.subr.bf16.mxu0 %v996_v50 }
  0x53   :  { %927 = vmatprep.subr.bf16.mxu1 %v997_v51 }
  0x55   :  { %906 = vmatpush3.bf16.msra.mxu0 %v998_v52 }
  0x56   :  { %928 = vmatpush3.bf16.msra.mxu1 %v999_v53  ;;  %907 = vmatprep.subr.bf16.mxu0 %v1000_v54 }
  0x57   :  { %929 = vmatprep.subr.bf16.mxu1 %v1001_v55 }
  0x59   :  { %908 = vmatpush3.bf16.msra.mxu0 %v1002_v56 }
  0x5a   :  { %930 = vmatpush3.bf16.msra.mxu1 %v1003_v57  ;;  %909 = vmatprep.subr.bf16.mxu0 %v1004_v58 }
  0x5b   :  { %931 = vmatprep.subr.bf16.mxu1 %v1005_v59 }
  0x5d   :  { %910 = vmatpush3.bf16.msra.mxu0 %v1006_v60 }
  0x5e   :  { %932 = vmatpush3.bf16.msra.mxu1 %v1007_v61  ;;  %911 = vmatprep.subr.bf16.mxu0 %v1008_v62 }
  0x5f   :  { %933 = vmatprep.subr.bf16.mxu1 %v1009_v63 }
  0x61   :  { %912 = vmatpush3.bf16.msra.mxu0 %v1010_v0 }
  0x62   :  { %934 = vmatpush3.bf16.msra.mxu1 %v1011_v1  ;;  %913 = vmatprep.subr.bf16.mxu0 %v1012_v2 }
  0x63   :  { %935 = vmatprep.subr.bf16.mxu1 %v1013_v3 }
  0x65   :  { %914 = vmatpush3.bf16.msra.mxu0 %v1014_v4 }
  0x66   :  { %936 = vmatpush3.bf16.msra.mxu1 %v1015_v5 }
  0x68   :  { %699 = vmatmul.mubr.bf16.vlgmr.msra.gmra.mrb[4].mxu0 %v786_v7 }
  0x69   :  { %739 = vmatmul.mubr.bf16.vlgmr.msra.gmra.mrb[4].mxu1 %v788_v10 }
 0x11b   :  { %v871_v12 = vpop.f32.mrb[0].mxu0 }
 0x11c   :  { %v893_v13 = vpop.f32.mrb[0].mxu1  ;;  %v872_v14 = vpop.f32.mrb[1].mxu0 }
 0x11d   :  { %v894_v15 = vpop.f32.mrb[1].mxu1  ;;  %v873_v16 = vadd.f32 %v872_v14, %v871_v12  ;;  %v874_v18 = vpop.f32.mrb[2].mxu0 }
 0x11e   :  { %v895_v17 = vadd.f32 %v894_v15, %v893_v13  ;;  %v896_v19 = vpop.f32.mrb[2].mxu1  ;;  %v875_v20 = vpop.f32.mrb[3].mxu0 }
 0x11f   :  { %v897_v21 = vpop.f32.mrb[3].mxu1 }
 0x120   :  { %v661_v22 = vadd.f32 %v895_v17, %v873_v16 }
 0x13b   :  { %v915_v23 = vpop.f32.mrb[4].mxu0 }
 0x13c   :  { %v937_v24 = vpop.f32.mrb[4].mxu1  ;;  %v916_v25 = vpop.f32.mrb[5].mxu0 }
 0x13d   :  { %v938_v26 = vpop.f32.mrb[5].mxu1  ;;  %v917_v27 = vadd.f32 %v916_v25, %v915_v23  ;;  %v918_v29 = vpop.f32.mrb[6].mxu0 }
 0x13e   :  { %v939_v28 = vadd.f32 %v938_v26, %v937_v24  ;;  %v940_v30 = vpop.f32.mrb[6].mxu1  ;;  %v919_v31 = vpop.f32.mrb[7].mxu0 }
 0x13f   :  { %v941_v32 = vpop.f32.mrb[7].mxu1  ;;  %v701_v33 = vadd.f32 %v917_v27, %v661_v22 }
 0x141   :  { %v741_v35 = vadd.f32 %v939_v28, %v701_v33 }
 0x143   :  { %v757_v36 = vadd.f32 %v854_v34, %v741_v35 }
 0x145   :  { %758 = vst [vmem:[#allocation7] sm:$0xff] %v757_v36 }
 0x146   :  { %1075 = shalt.err (!%p1072_p6)
}
 0x147   :  { %s1076_s16 = scalar_lea.hbm %s1166_s3, 128 }
 0x148   :  { %p1077_p7 = scmp.ne.s32.totalorder %s1166_s3, %s1076_s16  ;;  %p1080_p8 = scmp.lt.u32.totalorder %s1076_s16, %s1166_s3 }
 0x14a   :  { %p1082_p9 = pnand %p1080_p8, %p1077_p7 }
 0x14c   :  { %1085 = shalt.err (!%p1082_p9)
}
 0x14d   :  { %775 = dma.vmem_to_hbm [thread:$0]  %s773_s12, 128, %s1166_s3, [#allocation4]  }
 0x14e   :  { %1090 = dma.done.wait [#allocation4], 128  }
 0x14f   :  { %1091 = vsyncadd [#allocation4], 4294967168 }
 0x150   :  { %779 = vsyncpa [#allocation3], 1 }
 0x151   :  { %780 = vsyncpa [#allocation6], 1 }
 0x152   :  { %781 = vsyncpa [#allocation4], 1 }

</bundles_post_ra>
